<compile_context>
chip_gen: v5e
topology: v5e:2x2
jax: 0.10.0
libtpu: 0.0.40
codegen_flags: <defaults>
</compile_context>

<pallas_src>
import functools
import math

import jax
import jax.numpy as jnp
from jax.experimental import pallas as pl
from jax.experimental.pallas import tpu as pltpu

HID = 16          # hid_channel used by RC1D_SAPL (RC_1D(hid_channel=16))
MAX_LB = 16384    # max lanes per block: keeps f32 intermediates (~0.5 KB/lane)
                  # well inside scoped VMEM on v5e/v6e/v7x while amortizing the
                  # ~0.35us/step pipeline overhead and keeping stores lane-dense.


# ----------------------------- Pallas kernel ------------------------------- #
def _rc1d_kernel(x_ref, w1_ref, b1_ref, w2_ref, b2_ref, w3_ref, b3_ref,
                 w4_ref, b4_ref, o_ref, *, feature_dim):
    F = feature_dim
    x = x_ref[...]                                      # (1, Lb) f32
    Lb = x.shape[1]
    C = w1_ref.shape[0]

    # conv1: 1x1 conv, 1 -> C channels.  K=1 matmul would waste an MXU pass;
    # do it as a sublane-broadcast multiply + add on the VPU instead.
    h = x * w1_ref[...] + b1_ref[...]                   # (C, Lb)

    # Sequence-boundary masks, computed once at minimal (1, Lb) shape and
    # reused by both conv layers (broadcast across sublanes inside the where).
    pos = jax.lax.broadcasted_iota(jnp.int32, (1, Lb), 1) % F
    is_first = pos == 0
    is_last = pos == F - 1

    def replicate_conv3(h, w_ref, b_ref):
        # Lane-neighbor values via XLU rotates (own VLIW slot, no relayout
        # copies).  The rotate wraps around the block, but the block edges
        # always coincide with sequence edges (Lb % F == 0), so the replicate
        # masks below also fix the wrap.
        left = pltpu.roll(h, shift=1, axis=1)           # value at p-1
        right = pltpu.roll(h, shift=Lb - 1, axis=1)     # value at p+1
        left = jnp.where(is_first, h, left)             # replicate pad, left edge
        right = jnp.where(is_last, h, right)            # replicate pad, right edge
        # Fold the three taps into one (C,3C)@(3C,Lb) MXU matmul:
        # one MXU push + one result drain per layer instead of three.
        stacked = jnp.concatenate([left, h, right], axis=0)   # (3C, Lb)
        return (jnp.dot(w_ref[...], stacked, preferred_element_type=jnp.float32)
                + b_ref[...])

    # conv2 + residual + relu
    h = jnp.maximum(replicate_conv3(h, w2_ref, b2_ref) + h, 0.0)
    # conv3 + residual + relu
    h = jnp.maximum(replicate_conv3(h, w3_ref, b3_ref) + h, 0.0)

    # conv4: 1x1 conv, C -> 1 channel.  A 1-row matmul wastes an MXU pass;
    # use VPU multiply + sublane reduce instead.
    o_ref[...] = jnp.sum(h * w4_ref[...], axis=0, keepdims=True) + b4_ref[...]


# --------------------------- block-size selection --------------------------- #
def _pick_block(R, F):
    """Pick rows-per-block TR and padded row count R_pad.

    Constraints: Lb = TR*F is a multiple of 128 (lane-dense stores) and of F
    (sequence-boundary safety); Lb <= MAX_LB (VMEM); prefer >= 2 grid steps
    when the data allows it (v7x dual TensorCore + pipelining).
    """
    tr0 = 128 // math.gcd(F, 128)            # smallest TR with TR*F % 128 == 0
    max_m = max(1, MAX_LB // (tr0 * F))      # largest multiple keeping Lb <= MAX_LB
    units = -(-R // tr0)                     # aligned units needed to cover R
    m = min(max_m, units)
    if units > 1:
        m = min(m, -(-units // 2))           # keep at least 2 grid steps
    m = max(m, 1)
    TR = tr0 * m
    R_pad = -(-R // TR) * TR                 # pad rows so the grid divides evenly
    return TR, R_pad


# ------------------------------ host wrapper ------------------------------- #
def rc1d_sapl_forward(x, params):
    """x: (batch, num_node, feature_dim) -> (batch, num_node, feature_dim)."""
    w1, b1, w2, b2, w3, b3, w4, b4 = params       # PyTorch Conv1d layouts
    B, N, F = x.shape
    C = HID
    R = B * N

    TR, R_pad = _pick_block(R, F)
    Lb = TR * F
    L_pad = R_pad * F
    grid = (L_pad // Lb,)

    x_rows = x.astype(jnp.float32).reshape(R, F)
    if R_pad != R:
        x_rows = jnp.pad(x_rows, ((0, R_pad - R), (0, 0)))
    x_flat = x_rows.reshape(1, L_pad)

    # kernel-side parameter layouts
    kw1 = w1.reshape(C, 1)                                    # (C,1,1) -> (C,1)
    kb1 = b1.reshape(C, 1)
    kw2 = jnp.concatenate([w2[:, :, 0], w2[:, :, 1], w2[:, :, 2]], axis=1)  # (C,3C)
    kb2 = b2.reshape(C, 1)
    kw3 = jnp.concatenate([w3[:, :, 0], w3[:, :, 1], w3[:, :, 2]], axis=1)
    kb3 = b3.reshape(C, 1)
    kw4 = w4.reshape(C, 1)                                    # (1,C,1) -> (C,1)
    kb4 = b4.reshape(1, 1)
    kparams = (kw1, kb1, kw2, kb2, kw3, kb3, kw4, kb4)

    def full_spec(a):
        nd = a.ndim
        return pl.BlockSpec(a.shape, lambda i, _nd=nd: (0,) * _nd)

    # Explicit VMEM budget: ~0.5 KB of f32 intermediates per lane, with margin.
    vmem_limit = int(min(96 * 1024 * 1024, max(32 * 1024 * 1024, 640 * Lb)))

    kernel = functools.partial(_rc1d_kernel, feature_dim=F)

    out = pl.pallas_call(
        kernel,
        out_shape=jax.ShapeDtypeStruct((1, L_pad), jnp.float32),
        grid=grid,
        in_specs=[pl.BlockSpec((1, Lb), lambda i: (0, i))]
                 + [full_spec(p) for p in kparams],
        out_specs=pl.BlockSpec((1, Lb), lambda i: (0, i)),
        compiler_params=pltpu.CompilerParams(
            dimension_semantics=("parallel",),
            vmem_limit_bytes=vmem_limit),
    )(x_flat, *kparams)

    y = out.reshape(R_pad, F)[:R]
    return y.reshape(B, N, F)


# -------------------------- pure-JAX reference ----------------------------- #
def ref_forward(x, params):
    w1, b1, w2, b2, w3, b3, w4, b4 = params
    B, N, F = x.shape
    C = w1.shape[0]
    xr = x.astype(jnp.float32).reshape(B * N, F)
    h = xr[:, None, :] * w1.reshape(1, C, 1) + b1.reshape(1, C, 1)   # (R,C,F)

    def conv3_replicate(h, W, b):
        left = jnp.concatenate([h[:, :, :1], h[:, :, :-1]], axis=2)
        right = jnp.concatenate([h[:, :, 1:], h[:, :, -1:]], axis=2)
        out = (jnp.einsum('oc,rcf->rof', W[:, :, 0], left)
               + jnp.einsum('oc,rcf->rof', W[:, :, 1], h)
               + jnp.einsum('oc,rcf->rof', W[:, :, 2], right))
        return out + b.reshape(1, C, 1)

    h = jax.nn.relu(conv3_replicate(h, w2, b2) + h)
    h = jax.nn.relu(conv3_replicate(h, w3, b3) + h)
    y = jnp.einsum('c,rcf->rf', w4.reshape(C), h) + b4.reshape(1, 1)
    return y.reshape(B, N, F)


# --------------------------- parameter creation ----------------------------- #
def init_params(key, C=HID):
    """Deterministic init mimicking PyTorch Conv1d default (uniform +-1/sqrt(fan_in*k))."""
    ks = jax.random.split(key, 8)

    def u(k, shape, bound):
        return jax.random.uniform(k, shape, jnp.float32, -bound, bound)

    bnd1 = 1.0                      # conv1: fan_in = 1*1
    bnd2 = 1.0 / (C * 3) ** 0.5     # conv2/3: fan_in = C*3
    bnd4 = 1.0 / (C * 1) ** 0.5     # conv4: fan_in = C*1
    w1 = u(ks[0], (C, 1, 1), bnd1)
    b1 = u(ks[1], (C,), bnd1)
    w2 = u(ks[2], (C, C, 3), bnd2)
    b2 = u(ks[3], (C,), bnd2)
    w3 = u(ks[4], (C, C, 3), bnd2)
    b3 = u(ks[5], (C,), bnd2)
    w4 = u(ks[6], (1, C, 1), bnd4)
    b4 = u(ks[7], (1,), bnd4)
    return (w1, b1, w2, b2, w3, b3, w4, b4)


if __name__ == "__main__":
    key = jax.random.PRNGKey(0)
    k_x1, k_x2, k_p = jax.random.split(key, 3)
    params = init_params(k_p)

    # Case 1: canonical small shape (single aligned block).
    batch, num_node, feature_dim = 2, 4, 16
    x1 = jax.random.normal(k_x1, (batch, num_node, feature_dim), jnp.float32)
    y1 = jax.block_until_ready(rc1d_sapl_forward(x1, params))
    y1_ref = ref_forward(x1, params)
    assert y1.shape == (batch, num_node, feature_dim)
    assert jnp.allclose(y1, y1_ref, atol=1e-4, rtol=1e-4), (
        f"case1 max abs err = {float(jnp.max(jnp.abs(y1 - y1_ref)))}")

    # Case 2: exercises the row-padding fallback and a multi-step grid.
    b2_, n2_, f2_ = 3, 7, 24
    x2 = jax.random.normal(k_x2, (b2_, n2_, f2_), jnp.float32)
    y2 = jax.block_until_ready(rc1d_sapl_forward(x2, params))
    y2_ref = ref_forward(x2, params)
    assert y2.shape == (b2_, n2_, f2_)
    assert jnp.allclose(y2, y2_ref, atol=1e-4, rtol=1e-4), (
        f"case2 max abs err = {float(jnp.max(jnp.abs(y2 - y2_ref)))}")

    print("KERNEL_OK")
</pallas_src>

<mosaic_0001>
module attributes {stable_mosaic.version = 11 : i64} {
  func.func @_rc1d_kernel(%arg0: i32, %arg1: memref<1x128xf32, #tpu.memory_space<vmem>>, %arg2: memref<16x1xf32, #tpu.memory_space<vmem>>, %arg3: memref<16x1xf32, #tpu.memory_space<vmem>>, %arg4: memref<16x48xf32, #tpu.memory_space<vmem>>, %arg5: memref<16x1xf32, #tpu.memory_space<vmem>>, %arg6: memref<16x48xf32, #tpu.memory_space<vmem>>, %arg7: memref<16x1xf32, #tpu.memory_space<vmem>>, %arg8: memref<16x1xf32, #tpu.memory_space<vmem>>, %arg9: memref<1x1xf32, #tpu.memory_space<vmem>>, %arg10: memref<1x128xf32, #tpu.memory_space<vmem>>) attributes {dimension_semantics = [#tpu.dimension_semantics<parallel>], iteration_bounds = array<i64: 1>, scalar_prefetch = 0 : i64, scratch_operands = 0 : i64, tpu.core_type = #tpu.core_type<tc>, window_params = [{transform_indices = @transform_0, window_bounds = array<i64: 1, 128>}, {pipeline_mode = #tpu.pipeline_mode<synchronous>, transform_indices = @transform_1, window_bounds = array<i64: 16, 1>}, {pipeline_mode = #tpu.pipeline_mode<synchronous>, transform_indices = @transform_2, window_bounds = array<i64: 16, 1>}, {pipeline_mode = #tpu.pipeline_mode<synchronous>, transform_indices = @transform_3, window_bounds = array<i64: 16, 48>}, {pipeline_mode = #tpu.pipeline_mode<synchronous>, transform_indices = @transform_4, window_bounds = array<i64: 16, 1>}, {pipeline_mode = #tpu.pipeline_mode<synchronous>, transform_indices = @transform_5, window_bounds = array<i64: 16, 48>}, {pipeline_mode = #tpu.pipeline_mode<synchronous>, transform_indices = @transform_6, window_bounds = array<i64: 16, 1>}, {pipeline_mode = #tpu.pipeline_mode<synchronous>, transform_indices = @transform_7, window_bounds = array<i64: 16, 1>}, {pipeline_mode = #tpu.pipeline_mode<synchronous>, transform_indices = @transform_8, window_bounds = array<i64: 1, 1>}, {transform_indices = @transform_9, window_bounds = array<i64: 1, 128>}]} {
    %c0 = arith.constant 0 : index
    %c0_0 = arith.constant 0 : index
    %0 = vector.load %arg1[%c0, %c0_0] : memref<1x128xf32, #tpu.memory_space<vmem>>, vector<1x128xf32>
    %c0_1 = arith.constant 0 : index
    %c0_2 = arith.constant 0 : index
    %1 = vector.load %arg2[%c0_1, %c0_2] : memref<16x1xf32, #tpu.memory_space<vmem>>, vector<16x1xf32>
    %2 = vector.broadcast %0 : vector<1x128xf32> to vector<16x128xf32>
    %3 = vector.broadcast %1 : vector<16x1xf32> to vector<16x128xf32>
    %4 = arith.mulf %2, %3 : vector<16x128xf32>
    %c0_3 = arith.constant 0 : index
    %c0_4 = arith.constant 0 : index
    %5 = vector.load %arg3[%c0_3, %c0_4] : memref<16x1xf32, #tpu.memory_space<vmem>>, vector<16x1xf32>
    %6 = vector.broadcast %5 : vector<16x1xf32> to vector<16x128xf32>
    %7 = arith.addf %4, %6 : vector<16x128xf32>
    %8 = tpu.iota {dimensions = array<i32: 1>} : vector<1x128xi32>
    %c16_i32 = arith.constant 16 : i32
    %c0_i32 = arith.constant 0 : i32
    %9 = arith.cmpi eq, %c16_i32, %c0_i32 : i32
    %c1_i32 = arith.constant 1 : i32
    %10 = arith.select %9, %c1_i32, %c16_i32 : i32
    %11 = vector.broadcast %10 : i32 to vector<1x128xi32>
    %12 = arith.remsi %8, %11 : vector<1x128xi32>
    %c0_i32_5 = arith.constant 0 : i32
    %13 = vector.broadcast %c0_i32_5 : i32 to vector<1x128xi32>
    %14 = arith.cmpi ne, %12, %13 : vector<1x128xi32>
    %c0_i32_6 = arith.constant 0 : i32
    %15 = vector.broadcast %c0_i32_6 : i32 to vector<1x128xi32>
    %16 = arith.cmpi slt, %12, %15 : vector<1x128xi32>
    %c0_i32_7 = arith.constant 0 : i32
    %17 = arith.cmpi slt, %10, %c0_i32_7 : i32
    %18 = vector.broadcast %17 : i1 to vector<1x128xi1>
    %19 = vector.broadcast %18 : vector<1x128xi1> to vector<1x128xi1>
    %20 = arith.xori %16, %19 : vector<1x128xi1>
    %21 = arith.andi %20, %14 : vector<1x128xi1>
    %22 = vector.broadcast %10 : i32 to vector<1x128xi32>
    %23 = arith.addi %12, %22 : vector<1x128xi32>
    %24 = arith.select %21, %23, %12 : vector<1x128xi1>, vector<1x128xi32>
    %c0_i32_8 = arith.constant 0 : i32
    %25 = vector.broadcast %c0_i32_8 : i32 to vector<1x128xi32>
    %26 = arith.cmpi eq, %24, %25 : vector<1x128xi32>
    %c15_i32 = arith.constant 15 : i32
    %27 = vector.broadcast %c15_i32 : i32 to vector<1x128xi32>
    %28 = arith.cmpi eq, %24, %27 : vector<1x128xi32>
    %c1_i32_9 = arith.constant 1 : i32
    %29 = tpu.dynamic_rotate %7 by %c1_i32_9 dim 1 : vector<16x128xf32>, i32 -> vector<16x128xf32>
    %c127_i32 = arith.constant 127 : i32
    %30 = tpu.dynamic_rotate %7 by %c127_i32 dim 1 : vector<16x128xf32>, i32 -> vector<16x128xf32>
    %31 = vector.shape_cast %26 : vector<1x128xi1> to vector<1x128xi1>
    %32 = vector.broadcast %31 : vector<1x128xi1> to vector<16x128xi1>
    %33 = arith.select %32, %7, %29 : vector<16x128xi1>, vector<16x128xf32>
    %34 = vector.shape_cast %28 : vector<1x128xi1> to vector<1x128xi1>
    %35 = vector.broadcast %34 : vector<1x128xi1> to vector<16x128xi1>
    %36 = arith.select %35, %7, %30 : vector<16x128xi1>, vector<16x128xf32>
    %37 = tpu.concatenate %33, %7, %36 in 0 : vector<16x128xf32>, vector<16x128xf32>, vector<16x128xf32> -> vector<48x128xf32>
    %c0_10 = arith.constant 0 : index
    %c0_11 = arith.constant 0 : index
    %38 = vector.load %arg4[%c0_10, %c0_11] : memref<16x48xf32, #tpu.memory_space<vmem>>, vector<16x48xf32>
    %cst = arith.constant dense<0.000000e+00> : vector<16x128xf32>
    %39 = tpu.matmul %38, %37, %cst {dimension_numbers = #tpu.dot_dimension_numbers<[1], [0], [0], [1], [0, 0, 1, 1], [], []>} : vector<16x48xf32>, vector<48x128xf32>, vector<16x128xf32> -> vector<16x128xf32>
    %c0_12 = arith.constant 0 : index
    %c0_13 = arith.constant 0 : index
    %40 = vector.load %arg5[%c0_12, %c0_13] : memref<16x1xf32, #tpu.memory_space<vmem>>, vector<16x1xf32>
    %41 = vector.broadcast %40 : vector<16x1xf32> to vector<16x128xf32>
    %42 = arith.addf %39, %41 : vector<16x128xf32>
    %43 = arith.addf %42, %7 : vector<16x128xf32>
    %cst_14 = arith.constant 0.000000e+00 : f32
    %44 = vector.broadcast %cst_14 : f32 to vector<16x128xf32>
    %45 = arith.maximumf %43, %44 : vector<16x128xf32>
    %c1_i32_15 = arith.constant 1 : i32
    %46 = tpu.dynamic_rotate %45 by %c1_i32_15 dim 1 : vector<16x128xf32>, i32 -> vector<16x128xf32>
    %c127_i32_16 = arith.constant 127 : i32
    %47 = tpu.dynamic_rotate %45 by %c127_i32_16 dim 1 : vector<16x128xf32>, i32 -> vector<16x128xf32>
    %48 = vector.shape_cast %26 : vector<1x128xi1> to vector<1x128xi1>
    %49 = vector.broadcast %48 : vector<1x128xi1> to vector<16x128xi1>
    %50 = arith.select %49, %45, %46 : vector<16x128xi1>, vector<16x128xf32>
    %51 = vector.shape_cast %28 : vector<1x128xi1> to vector<1x128xi1>
    %52 = vector.broadcast %51 : vector<1x128xi1> to vector<16x128xi1>
    %53 = arith.select %52, %45, %47 : vector<16x128xi1>, vector<16x128xf32>
    %54 = tpu.concatenate %50, %45, %53 in 0 : vector<16x128xf32>, vector<16x128xf32>, vector<16x128xf32> -> vector<48x128xf32>
    %c0_17 = arith.constant 0 : index
    %c0_18 = arith.constant 0 : index
    %55 = vector.load %arg6[%c0_17, %c0_18] : memref<16x48xf32, #tpu.memory_space<vmem>>, vector<16x48xf32>
    %cst_19 = arith.constant dense<0.000000e+00> : vector<16x128xf32>
    %56 = tpu.matmul %55, %54, %cst_19 {dimension_numbers = #tpu.dot_dimension_numbers<[1], [0], [0], [1], [0, 0, 1, 1], [], []>} : vector<16x48xf32>, vector<48x128xf32>, vector<16x128xf32> -> vector<16x128xf32>
    %c0_20 = arith.constant 0 : index
    %c0_21 = arith.constant 0 : index
    %57 = vector.load %arg7[%c0_20, %c0_21] : memref<16x1xf32, #tpu.memory_space<vmem>>, vector<16x1xf32>
    %58 = vector.broadcast %57 : vector<16x1xf32> to vector<16x128xf32>
    %59 = arith.addf %56, %58 : vector<16x128xf32>
    %60 = arith.addf %59, %45 : vector<16x128xf32>
    %cst_22 = arith.constant 0.000000e+00 : f32
    %61 = vector.broadcast %cst_22 : f32 to vector<16x128xf32>
    %62 = arith.maximumf %60, %61 : vector<16x128xf32>
    %c0_23 = arith.constant 0 : index
    %c0_24 = arith.constant 0 : index
    %63 = vector.load %arg8[%c0_23, %c0_24] : memref<16x1xf32, #tpu.memory_space<vmem>>, vector<16x1xf32>
    %64 = vector.broadcast %63 : vector<16x1xf32> to vector<16x128xf32>
    %65 = arith.mulf %62, %64 : vector<16x128xf32>
    %cst_25 = arith.constant dense<0.000000e+00> : vector<128xf32>
    %66 = vector.multi_reduction <add>, %65, %cst_25 [0] : vector<16x128xf32> to vector<128xf32>
    %67 = vector.shape_cast %66 : vector<128xf32> to vector<1x128xf32>
    %c0_26 = arith.constant 0 : index
    %c0_27 = arith.constant 0 : index
    %68 = vector.load %arg9[%c0_26, %c0_27] : memref<1x1xf32, #tpu.memory_space<vmem>>, vector<1x1xf32>
    %69 = vector.broadcast %68 : vector<1x1xf32> to vector<1x128xf32>
    %70 = arith.addf %67, %69 : vector<1x128xf32>
    %c0_28 = arith.constant 0 : index
    %c0_29 = arith.constant 0 : index
    %71 = vector.load %arg10[%c0_28, %c0_29] : memref<1x128xf32, #tpu.memory_space<vmem>>, vector<1x128xf32>
    tpu.vector_store %arg10[%c0_28, %c0_29], %70 {strides = array<i32>} : memref<1x128xf32, #tpu.memory_space<vmem>>, vector<1x128xf32>,
    return
  }
  func.func @transform_0(%arg0: i32) -> (i32, i32) {
    %c0_i32 = arith.constant 0 : i32
    %c0_i32_0 = arith.constant 0 : i32
    return %c0_i32, %arg0 : i32, i32
  }
  func.func @transform_1(%arg0: i32) -> (i32, i32) {
    %c0_i32 = arith.constant 0 : i32
    %c0_i32_0 = arith.constant 0 : i32
    %c0_i32_1 = arith.constant 0 : i32
    return %c0_i32, %c0_i32_0 : i32, i32
  }
  func.func @transform_2(%arg0: i32) -> (i32, i32) {
    %c0_i32 = arith.constant 0 : i32
    %c0_i32_0 = arith.constant 0 : i32
    %c0_i32_1 = arith.constant 0 : i32
    return %c0_i32, %c0_i32_0 : i32, i32
  }
  func.func @transform_3(%arg0: i32) -> (i32, i32) {
    %c0_i32 = arith.constant 0 : i32
    %c0_i32_0 = arith.constant 0 : i32
    %c0_i32_1 = arith.constant 0 : i32
    return %c0_i32, %c0_i32_0 : i32, i32
  }
  func.func @transform_4(%arg0: i32) -> (i32, i32) {
    %c0_i32 = arith.constant 0 : i32
    %c0_i32_0 = arith.constant 0 : i32
    %c0_i32_1 = arith.constant 0 : i32
    return %c0_i32, %c0_i32_0 : i32, i32
  }
  func.func @transform_5(%arg0: i32) -> (i32, i32) {
    %c0_i32 = arith.constant 0 : i32
    %c0_i32_0 = arith.constant 0 : i32
    %c0_i32_1 = arith.constant 0 : i32
    return %c0_i32, %c0_i32_0 : i32, i32
  }
  func.func @transform_6(%arg0: i32) -> (i32, i32) {
    %c0_i32 = arith.constant 0 : i32
    %c0_i32_0 = arith.constant 0 : i32
    %c0_i32_1 = arith.constant 0 : i32
    return %c0_i32, %c0_i32_0 : i32, i32
  }
  func.func @transform_7(%arg0: i32) -> (i32, i32) {
    %c0_i32 = arith.constant 0 : i32
    %c0_i32_0 = arith.constant 0 : i32
    %c0_i32_1 = arith.constant 0 : i32
    return %c0_i32, %c0_i32_0 : i32, i32
  }
  func.func @transform_8(%arg0: i32) -> (i32, i32) {
    %c0_i32 = arith.constant 0 : i32
    %c0_i32_0 = arith.constant 0 : i32
    %c0_i32_1 = arith.constant 0 : i32
    return %c0_i32, %c0_i32_0 : i32, i32
  }
  func.func @transform_9(%arg0: i32) -> (i32, i32) {
    %c0_i32 = arith.constant 0 : i32
    %c0_i32_0 = arith.constant 0 : i32
    return %c0_i32, %arg0 : i32, i32
  }
}

</mosaic_0001>

<bundles_post_ra>
// kernel: tpu_custom_call.1
= control target key start
LH: loop header
LB: loop body
LE: loop exit
PB: predicated region body
PF: predicated region fallthrough
CT: control target
= control target key end

     0   :  { %s459_s0 = inlined_call_operand.vmem [shape: f32[1,128], index: 0, kind: input, shape index: {}]   ;;  %s460_s1 = inlined_call_operand.vmem [shape: f32[16,1], index: 1, kind: input, shape index: {}]   ;;  %s461_s2 = inlined_call_operand.vmem [shape: f32[16,1], index: 2, kind: input, shape index: {}]   ;;  %s462_s3 = inlined_call_operand.vmem [shape: f32[16,48], index: 3, kind: input, shape index: {}]   ;;  %s463_s4 = inlined_call_operand.vmem [shape: f32[16,1], index: 4, kind: input, shape index: {}]   ;;  %s464_s5 = inlined_call_operand.vmem [shape: f32[16,48], index: 5, kind: input, shape index: {}]   ;;  %s465_s6 = inlined_call_operand.vmem [shape: f32[16,1], index: 6, kind: input, shape index: {}]   ;;  %s466_s7 = inlined_call_operand.vmem [shape: f32[16,1], index: 7, kind: input, shape index: {}]   ;;  %s467_s8 = inlined_call_operand.<no memory space> [shape: f32[1,1], index: 8, kind: input, shape index: {}]   ;;  %s468_s9 = inlined_call_operand.hbm [shape: f32[1,128], index: 9, kind: output, shape index: {}]  }
   0x1   :  { %v14_v0 = vstv %s467_s8 }
   0x2   :  { %15 = vst [vmem:[#allocation2] sm:$0x1] %v14_v0 }
   0x3   :  { %v54_v1 = vld [vmem:[%s461_s2 + $0x8] sm:$0xff]  ;;  %v322_v3 = vmov 0  }
   0x4   :  { %v37_v2 = vld [vmem:[%s460_s1 + $0x8] sm:$0xff]  ;;  %273 = vset.pattern.permute.xlu1 %v322_v3  ;;  %272 = vset.pattern.permute.xlu0 %v322_v3 }
   0x5   :  { %62 = vperm.xlu1 %273, %v54_v1   ;;  %48 = vperm.xlu0 %272, %v37_v2  }
   0x6   :  { %294 = vset.pattern.permute.xlu2 %v322_v3 }
   0x7   :  { %16 = vsyncpa [#allocation4], 0  ;;  %v53_v4 = vld [vmem:[%s461_s2] sm:$0xff]  ;;  %v102_v7 = vld [vmem:[%s463_s4 + $0x8] sm:$0xff]  ;;  %s324_s26 = smov 1   ;;  %v67_v20 = vlaneseq  ;;  %vm113_vm2 = vcmask 392192  }
   0x8   :  { %v36_v5 = vld [vmem:[%s460_s1] sm:$0xff]  ;;  %v207_v9 = vld [vmem:[%s466_s7 + $0x8] sm:$0xff]  ;;  %s243_s8 = sshll.u32 %s468_s9, 4  ;;  %s244_s8 = int_to_ptr.hbm [resolvable:$true] %s243_s8 }
   0x9   :  { %v101_v6 = vld [vmem:[%s463_s4] sm:$0xff]  ;;  %s323_s4 = smov 127   ;;  %v68_v21 = vand.u32 127, %v67_v20  ;;  %v100_v35 = vld [vmem:[%s462_s3 + $0x8] sm:$0xff] }
   0xa   :  { %v161_v8 = vld [vmem:[%s465_s6] sm:$0xff]  ;;  %v162_v50 = vld [vmem:[%s465_s6 + $0x8] sm:$0xff] }
   0xb   :  { %v295_v12 = vld [vmem:[%s459_s0] ss:$0 sm:$0xff]  ;;  %v73_v22 = vand.u32 15, %v68_v21  ;;  %v160_v61 = vld [vmem:[%s464_s5 + $0x8] sm:$0xff] }
   0xc   :  { %v99_v34 = vld [vmem:[%s462_s3] sm:$0xff] }
   0xd   :  { %57 = vperm.xlu1 %273, %v53_v4   ;;  %43 = vperm.xlu0 %272, %v36_v5   ;;  %vm408_vm0 = vcmp.eq.s32.totalorder %v73_v22, 15  ;;  %vm416_vm1 = vcmp.eq.s32.totalorder %v73_v22, 0  ;;  %v206_v48 = vld [vmem:[%s466_s7] sm:$0xff] }
   0xe   :  { %v227_v55 = vld [vmem:[#allocation2] sm:$0x1] }
   0xf   :  { %v159_v60 = vld [vmem:[%s464_s5] sm:$0xff]  ;;  %s325_s5 = smov [#allocation3]  }
  0x10   :  { %s241_s14 = sshll.u32 %s325_s5, 4  ;;  %s242_s14 = int_to_ptr.vmem [resolvable:$true] %s241_s14 }
  0x15   :  { %105 = vperm.xlu1 %273, %v101_v6   ;;  %110 = vperm.xlu0 %272, %v102_v7  }
  0x1d   :  { %165 = vperm.xlu1 %273, %v161_v8  }
  0x25   :  { %215 = vperm.xlu1 %273, %v207_v9  }
  0x77   :  { %v63_v10 = vpop.permute.xlu1 %62  ;;  %v49_v11 = vpop.permute.xlu0 %48 }
  0x78   :  { %v52_v13 = vmul.f32 %v295_v12, %v49_v11 }
  0x7a   :  { %v66_v17 = vadd.f32 %v63_v10, %v52_v13 }
  0x7f   :  { %v44_v14 = vpop.permute.xlu0 %43  ;;  %v58_v16 = vpop.permute.xlu1 %57 }
  0x80   :  { %v51_v15 = vmul.f32 %v295_v12, %v44_v14 }
  0x82   :  { %v65_v18 = vadd.f32 %v58_v16, %v51_v15 }
  0x84   :  { %v274_v19 = vpack.i.bf16 %v65_v18, %v66_v17 }
  0x86   :  { %275 = vrot.lane.b32.xlu2 %v274_v19, %s323_s4 }
  0x87   :  { %v106_v38 = vpop.permute.xlu1 %105  ;;  %v111_v40 = vpop.permute.xlu0 %110 }
  0x8e   :  { %280 = vrot.lane.b32.xlu2 %v274_v19, %s324_s26 }
  0x8f   :  { %v166_v63 = vpop.permute.xlu1 %165 }
  0x97   :  { %v216_v9 = vpop.permute.xlu1 %215 }
  0xe0   :  { %v276_v23 = vpop.permute.xlu2 %275 }
  0xe1   :  { %v278_v25 = vunpack.i.h.bf16 %v276_v23  ;;  %v277_v26 = vunpack.i.l.bf16 %v276_v23 }
  0xe3   :  { %v98_v27 = vsel %vm408_vm0, %v66_v17, %v277_v26  ;;  %v97_v28 = vsel %vm408_vm0, %v65_v18, %v278_v25 }
  0xe4   :  { %130 = vmatpush.msra.mxu0 %v98_v27  ;;  %256 = vmatpush.msra.mxu2 %v98_v27 }
  0xe6   :  { %131 = vmatpush.msra.mxu0 %v97_v28  ;;  %257 = vmatpush.msra.mxu2 %v97_v28 }
  0xe8   :  { %v281_v29 = vpop.permute.xlu2 %280  ;;  %132 = vmatpush.msra.mxu0 %v66_v17  ;;  %258 = vmatpush.msra.mxu2 %v66_v17 }
  0xe9   :  { %v283_v31 = vunpack.i.h.bf16 %v281_v29  ;;  %v282_v32 = vunpack.i.l.bf16 %v281_v29 }
  0xea   :  { %133 = vmatpush.msra.mxu0 %v65_v18  ;;  %259 = vmatpush.msra.mxu2 %v65_v18 }
  0xeb   :  { %v94_v33 = vsel %vm416_vm1, %v66_v17, %v282_v32  ;;  %v93_v36 = vsel %vm416_vm1, %v65_v18, %v283_v31 }
  0xec   :  { %134 = vmatpush.msra.mxu0 %v94_v33  ;;  %260 = vmatpush.msra.mxu2 %v94_v33 }
  0xee   :  { %135 = vmatpush.msra.mxu0 %v93_v36  ;;  %261 = vmatpush.msra.mxu2 %v93_v36 }
  0xef   :  { %252 = vmatmul.msk.f32.vlgmr.msra.gmra.mxu0 %vm113_vm2, %v99_v34  ;;  %253 = vmatmul.msk.f32.vlgmr.msra.gmra.mxu2 %vm113_vm2, %v100_v35 }
 0x16c   :  { %v137_v37 = vpop.f32.mrf.mxu0 }
 0x16d   :  { %v138_v39 = vadd.f32 %v137_v37, %v106_v38 }
 0x16f   :  { %v143_v42 = vadd.f32 %v138_v39, %v65_v18 }
 0x171   :  { %v145_v45 = vmax.f32 %v143_v42, 0.0 }
 0x172   :  { %v140_v41 = vpop.f32.mrf.mxu2 }
 0x173   :  { %v141_v43 = vadd.f32 %v140_v41, %v111_v40 }
 0x175   :  { %v144_v44 = vadd.f32 %v141_v43, %v66_v17 }
 0x177   :  { %v146_v46 = vmax.f32 %v144_v44, 0.0 }
 0x179   :  { %v289_v47 = vpack.i.bf16 %v145_v45, %v146_v46 }
 0x17b   :  { %290 = vrot.lane.b32.xlu0 %v289_v47, %s324_s26  ;;  %285 = vrot.lane.b32.xlu2 %v289_v47, %s323_s4 }
 0x183   :  { %210 = vperm.xlu0 %272, %v206_v48   ;;  %170 = vperm.xlu2 %294, %v162_v50  }
 0x18b   :  { %230 = vperm.xlu2 %294, %v227_v55  }
 0x1d5   :  { %v286_v49 = vpop.permute.xlu2 %285 }
 0x1d6   :  { %v288_v51 = vunpack.i.h.bf16 %v286_v49  ;;  %v287_v52 = vunpack.i.l.bf16 %v286_v49 }
 0x1d8   :  { %v158_v53 = vsel %vm408_vm0, %v146_v46, %v287_v52  ;;  %v157_v54 = vsel %vm408_vm0, %v145_v45, %v288_v51 }
 0x1d9   :  { %189 = vmatpush.msra.mxu1 %v158_v53  ;;  %262 = vmatpush.msra.mxu3 %v158_v53 }
 0x1db   :  { %190 = vmatpush.msra.mxu1 %v157_v54  ;;  %263 = vmatpush.msra.mxu3 %v157_v54 }
 0x1dd   :  { %191 = vmatpush.msra.mxu1 %v146_v46  ;;  %264 = vmatpush.msra.mxu3 %v146_v46  ;;  %v171_v3 = vpop.permute.xlu2 %170 }
 0x1df   :  { %192 = vmatpush.msra.mxu1 %v145_v45  ;;  %265 = vmatpush.msra.mxu3 %v145_v45 }
 0x1e5   :  { %v231_v18 = vpop.permute.xlu2 %230 }
 0x1e6   :  { %v233_v20 = vperm.slane %v231_v18, 0 }
 0x1ed   :  { %v291_v56 = vpop.permute.xlu0 %290 }
 0x1ee   :  { %v293_v57 = vunpack.i.h.bf16 %v291_v56  ;;  %v292_v58 = vunpack.i.l.bf16 %v291_v56 }
 0x1f0   :  { %v156_v59 = vsel %vm416_vm1, %v146_v46, %v292_v58  ;;  %v155_v62 = vsel %vm416_vm1, %v145_v45, %v293_v57 }
 0x1f1   :  { %193 = vmatpush.msra.mxu1 %v156_v59  ;;  %266 = vmatpush.msra.mxu3 %v156_v59 }
 0x1f3   :  { %194 = vmatpush.msra.mxu1 %v155_v62  ;;  %267 = vmatpush.msra.mxu3 %v155_v62 }
 0x1f4   :  { %254 = vmatmul.msk.f32.vlgmr.msra.gmra.mxu1 %vm113_vm2, %v159_v60  ;;  %255 = vmatmul.msk.f32.vlgmr.msra.gmra.mxu3 %vm113_vm2, %v160_v61 }
 0x1f5   :  { %v211_v10 = vpop.permute.xlu0 %210 }
 0x271   :  { %v196_v0 = vpop.f32.mrf.mxu1 }
 0x272   :  { %v197_v1 = vadd.f32 %v196_v0, %v166_v63 }
 0x274   :  { %v202_v2 = vadd.f32 %v197_v1, %v145_v45 }
 0x276   :  { %v204_v6 = vmax.f32 %v202_v2, 0.0 }
 0x277   :  { %v199_v4 = vpop.f32.mrf.mxu3 }
 0x278   :  { %v200_v5 = vadd.f32 %v199_v4, %v171_v3  ;;  %v218_v11 = vmul.f32 %v211_v10, %v204_v6 }
 0x27a   :  { %v203_v7 = vadd.f32 %v200_v5, %v146_v46 }
 0x27c   :  { %v205_v8 = vmax.f32 %v203_v7, 0.0 }
 0x27e   :  { %v219_v12 = vmul.f32 %v216_v9, %v205_v8 }
 0x280   :  { %v220_v13 = vadd.f32 %v219_v12, %v218_v11 }
 0x282   :  { %v221_v14 = vrot.slane %v220_v13, 4 }
 0x284   :  { %v222_v15 = vadd.f32 %v221_v14, %v220_v13 }
 0x286   :  { %v223_v16 = vrot.slane %v222_v15, 2 }
 0x288   :  { %v224_v17 = vadd.f32 %v223_v16, %v222_v15 }
 0x28a   :  { %v225_v19 = vrot.slane %v224_v17, 1 }
 0x28c   :  { %v226_v21 = vadd.f32 %v225_v19, %v224_v17 }
 0x28e   :  { %v234_v22 = vadd.f32 %v233_v20, %v226_v21 }
 0x290   :  { %235 = vst [vmem:[#allocation3] sm:$0x1] %v234_v22 }
 0x291   :  { %246 = dma.vmem_to_hbm [thread:$0]  %s242_s14, 16, %s244_s8, [#allocation4]  }
 0x292   :  { %320 = dma.done.wait [#allocation4], 16  }
 0x293   :  { %321 = vsyncadd [#allocation4], 4294967280 }
 0x294   :  { %251 = vsyncpa [#allocation4], 1 }

</bundles_post_ra>
